<compile_context>
chip_gen: v7x
topology: tpu7x:2x2x1
jax: 0.10.0
libtpu: 0.0.40
codegen_flags: <defaults>
</compile_context>

<pallas_src>
import math

import jax
import jax.numpy as jnp
import numpy as np
from jax.experimental import pallas as pl
from jax.experimental.pallas import tpu as pltpu


# -----------------------------------------------------------------------------
# Fused Pallas kernel: cross-modal spatial attention weights (summed over the
# batch, per-frame softmax over the flattened spatial axis) * x, in one pass.
# -----------------------------------------------------------------------------
def fused_spatial_attention_multiply(x, y_k, wc, bc, wa, ba):
    """x: (bs, C, T, H, W); y_k: (bs, k); wc: (C, k); bc: (1, k);
    wa: (1, k); ba: (1, 1).  Returns result = x * res, shape (bs, C, T, H, W).

    `ba` is accepted for interface parity but never used: softmax is shift
    invariant, so a per-frame constant bias cannot affect the output."""
    del ba
    bs, C, T, H, W = x.shape
    S = H * W
    TS = T * S
    k = wc.shape[1]

    # Lane/sublane-dense layout for x: (bs*C, T*S) = (8, 256) -> every tile is
    # exactly (8,128)-aligned (free reshape, no transpose / copy).
    x_2d = x.reshape(bs * C, TS).astype(jnp.float32)

    # Pack the small parameters into ONE operand (one DMA / one BlockSpec):
    #   cols [0:C]        -> wc^T                 (k, C)
    #   cols [C:C+bs]     -> (y_k + bc)^T         (k, bs)
    #   col  [C+bs]       -> attn weight (row)^T  (k, 1)
    wct = jnp.transpose(wc).astype(jnp.float32)                          # (k, C)
    ykb = jnp.transpose(y_k.astype(jnp.float32)
                        + bc.reshape(1, k).astype(jnp.float32))          # (k, bs)
    wat = wa.reshape(k, 1).astype(jnp.float32)                           # (k, 1)
    packed = jnp.concatenate([wct, ykb, wat], axis=1)                    # (k, C+bs+1)

    # TODO(synk): at realistic vision resolutions (large S*C) this single-step
    # kernel must be re-tiled: grid over (bs or T, spatial) with an online
    # softmax, a 'parallel' leading axis (2 TensorCores on v7x), explicit
    # vmem_limit_bytes (v7x has 64 MiB VMEM, scoped default 32 MiB), bf16 x on
    # v7x, and optionally input_output_aliases={0: 0} once the caller no
    # longer needs x.  At these toy shapes everything fits in VMEM.
    # TODO(synk): on v6e/v7x the tanh/exp block could run in bf16 (2x EUP
    # throughput); kept f32 here so one code path is exact on v5e as well.
    def kernel(x_ref, p_ref, o_ref):
        xv = x_ref[...]                                  # (bs*C, TS), one full load
        p = p_ref[...]                                   # (k, C+bs+1)
        wct_v = p[:, 0:C]                                # (k, C)
        ykb_v = p[:, C:C + bs]                           # (k, bs)
        wat_v = p[:, C + bs:C + bs + 1]                  # (k, 1)

        # channel_affine as a VPU contraction over C (K=4 is far too small for
        # the MXU).  Channel loop outermost so each wct-column broadcast is
        # built exactly once (JAX does not CSE broadcast_in_dim).
        acc = [jnp.broadcast_to(ykb_v[:, i:i + 1], (k, TS)) for i in range(bs)]
        for c in range(C):
            w_cb = jnp.broadcast_to(wct_v[:, c:c + 1], (k, TS))
            for i in range(bs):
                acc[i] = acc[i] + w_cb * xv[i * C + c:i * C + c + 1, :]

        # tanh + attn_weight_affine reduction over k -> per-batch (1, TS) scores.
        wat_b = jnp.broadcast_to(wat_v, (k, TS))
        rows = []                                        # bs*T pieces of (1, S)
        for i in range(bs):
            h = jnp.tanh(acc[i])                         # (k, TS)
            s_i = jnp.sum(h * wat_b, axis=0, keepdims=True)   # (1, TS)
            rows.extend([s_i[:, t * S:(t + 1) * S] for t in range(T)])

        # Vectorized per-frame softmax: a single (bs*T, S) block -> one max,
        # one exp, one sum, one approx reciprocal.  (The attn bias `ba` is
        # dropped: softmax is shift invariant.)
        sbt = jnp.concatenate(rows, axis=0)              # (bs*T, S)
        m = jnp.max(sbt, axis=-1, keepdims=True)
        e = jnp.exp(sbt - m)
        d = jnp.sum(e, axis=-1, keepdims=True)
        sm = e * pl.reciprocal(d, approx=True)           # (bs*T, S)

        # Batch sum, then back to the lane-dense (1, TS) layout so the final
        # broadcast multiply is one unmasked full-width store.
        res_ts = sm[0:T, :]
        for i in range(1, bs):
            res_ts = res_ts + sm[i * T:(i + 1) * T, :]   # (T, S)
        res_flat = jnp.concatenate(
            [res_ts[t:t + 1, :] for t in range(T)], axis=1)   # (1, TS)

        o_ref[...] = xv * res_flat                       # (bs*C, TS) dense store

    out = pl.pallas_call(
        kernel,
        out_shape=jax.ShapeDtypeStruct((bs * C, TS), jnp.float32),
        grid=(1,),                                       # whole problem in VMEM
        in_specs=[
            pl.BlockSpec((bs * C, TS), lambda g: (0, 0)),        # (8, 256)
            pl.BlockSpec((k, C + bs + 1), lambda g: (0, 0)),     # packed params
        ],
        out_specs=pl.BlockSpec((bs * C, TS), lambda g: (0, 0)),
        compiler_params=pltpu.CompilerParams(
            dimension_semantics=("arbitrary",)),
    )(x_2d, packed)
    return out.reshape(bs, C, T, H, W)


# -----------------------------------------------------------------------------
# MulT-style TransformerEncoder (audio_attention) in plain JAX, eval mode.
# TODO(synk): the original TransformerEncoder lives in another file; this is a
#             faithful MulT-style re-implementation with all dropouts disabled.
# -----------------------------------------------------------------------------
def _layer_norm(x, scale, bias, eps=1e-5):
    mean = jnp.mean(x, axis=-1, keepdims=True)
    var = jnp.mean(jnp.square(x - mean), axis=-1, keepdims=True)
    return (x - mean) * jax.lax.rsqrt(var + eps) * scale + bias


def _sinusoidal_pos_emb(seq_len, dim):
    half = dim // 2
    scale = math.log(10000.0) / max(half - 1, 1)
    freqs = jnp.exp(-scale * jnp.arange(half, dtype=jnp.float32))
    pos = jnp.arange(seq_len, dtype=jnp.float32)
    args = pos[:, None] * freqs[None, :]
    pe = jnp.concatenate([jnp.sin(args), jnp.cos(args)], axis=-1)
    if dim % 2 == 1:
        pe = jnp.pad(pe, ((0, 0), (0, 1)))
    return pe                                                         # (seq, dim)


def _self_attention(x, lp, num_heads):
    seq, bs, k = x.shape
    hd = k // num_heads
    qkv = x @ lp["in_proj_w"].T + lp["in_proj_b"]                     # (seq, bs, 3k)
    q, kk, v = jnp.split(qkv, 3, axis=-1)
    q = q * (hd ** -0.5)

    def heads(t):
        return t.reshape(seq, bs * num_heads, hd).transpose(1, 0, 2)  # (bs*h, seq, hd)

    q, kk, v = heads(q), heads(kk), heads(v)
    attn = jnp.einsum("bqd,bkd->bqk", q, kk)
    causal = jnp.where(jnp.arange(seq)[None, :] > jnp.arange(seq)[:, None],
                       -jnp.inf, 0.0)                                 # attn_mask=True
    attn = jax.nn.softmax(attn + causal[None], axis=-1)
    out = jnp.einsum("bqk,bkd->bqd", attn, v)
    out = out.transpose(1, 0, 2).reshape(seq, bs, k)
    return out @ lp["out_proj_w"].T + lp["out_proj_b"]


def transformer_encoder(x_in, tparams, num_heads):
    seq, bs, k = x_in.shape
    x = math.sqrt(k) * x_in + _sinusoidal_pos_emb(seq, k)[:, None, :]
    for lp in tparams["layers"]:                                      # pre-LN blocks
        h = _layer_norm(x, lp["ln1_s"], lp["ln1_b"])
        x = x + _self_attention(h, lp, num_heads)
        h = _layer_norm(x, lp["ln2_s"], lp["ln2_b"])
        h = jax.nn.relu(h @ lp["fc1_w"].T + lp["fc1_b"])
        x = x + (h @ lp["fc2_w"].T + lp["fc2_b"])
    return _layer_norm(x, tparams["lnf_s"], tparams["lnf_b"])


# -----------------------------------------------------------------------------
# Parameter init (deterministic, synthetic) + full forward
# -----------------------------------------------------------------------------
def init_params(key, k, x_channels, y_size, num_heads=8, num_layers=5):
    keys = iter(jax.random.split(key, 64))

    def lin(shape, scale=0.05):
        return scale * jax.random.normal(next(keys), shape, dtype=jnp.float32)

    params = dict(k=k, num_heads=num_heads)
    params["channel_affine_w"] = lin((x_channels, k))          # Linear(x_channels, k)
    params["channel_affine_b"] = lin((1, k))
    params["y_affine_w"] = lin((y_size, k))                    # Linear(y_size, k), no bias
    params["attn_weight_affine_w"] = lin((1, k))               # Linear(k, 1) weight (row)
    params["attn_weight_affine_b"] = lin((1, 1))

    ffn = 4 * k
    layers = []
    for _ in range(num_layers):
        layers.append(dict(
            in_proj_w=lin((3 * k, k)), in_proj_b=jnp.zeros((3 * k,), jnp.float32),
            out_proj_w=lin((k, k)), out_proj_b=jnp.zeros((k,), jnp.float32),
            ln1_s=jnp.ones((k,), jnp.float32), ln1_b=jnp.zeros((k,), jnp.float32),
            fc1_w=lin((ffn, k)), fc1_b=jnp.zeros((ffn,), jnp.float32),
            fc2_w=lin((k, ffn)), fc2_b=jnp.zeros((k,), jnp.float32),
            ln2_s=jnp.ones((k,), jnp.float32), ln2_b=jnp.zeros((k,), jnp.float32),
        ))
    params["audio_attention"] = dict(
        layers=layers,
        lnf_s=jnp.ones((k,), jnp.float32), lnf_b=jnp.zeros((k,), jnp.float32))
    return params


def cross_modal_attention_forward(params, x, y):
    """x: (bs, C, T, H, W), y: (bs, k, seq). Returns [result, original_y]."""
    original_y = y

    # h_vs = audio_attention(y.permute(2, 0, 1)); last_vs = h_vs[-1]
    y_t = jnp.transpose(y, (2, 0, 1)).astype(jnp.float32)             # (seq, bs, k)
    h_vs = transformer_encoder(y_t, params["audio_attention"], params["num_heads"])
    last_vs = h_vs[-1]                                                # (bs, k)
    y_k = last_vs @ params["y_affine_w"]                              # (bs, k)

    result = fused_spatial_attention_multiply(
        x.astype(jnp.float32), y_k.astype(jnp.float32),
        params["channel_affine_w"], params["channel_affine_b"],
        params["attn_weight_affine_w"], params["attn_weight_affine_b"])
    return [result, original_y]


# -----------------------------------------------------------------------------
# Pure-JAX reference for the Pallas part (correctness sanity check)
# -----------------------------------------------------------------------------
def reference_spatial_part(x, y_k, params):
    bs, C, T, H, W = x.shape
    wc, bc = params["channel_affine_w"], params["channel_affine_b"]
    wa, ba = params["attn_weight_affine_w"], params["attn_weight_affine_b"]
    res = jnp.zeros((T, H, W), jnp.float32)
    for i in range(bs):
        x_t = jnp.transpose(x[i], (1, 2, 3, 0))                       # (T, H, W, C)
        x_k = jnp.tanh(x_t @ wc + bc.reshape(-1) + y_k[i])
        w = (x_k @ wa.reshape(-1, 1))[..., 0] + ba[0, 0]
        res = res + jax.nn.softmax(w.reshape(T, -1), axis=-1).reshape(T, H, W)
    return x * res


if __name__ == "__main__":
    k_dim, x_channels, y_size = 32, 4, 32
    bs, T, H, W, seq = 2, 4, 8, 8, 8

    key = jax.random.PRNGKey(0)
    kp, kx, ky = jax.random.split(key, 3)
    params = init_params(kp, k_dim, x_channels, y_size)
    x = jax.random.normal(kx, (bs, x_channels, T, H, W), dtype=jnp.float32)
    y = jax.random.normal(ky, (bs, k_dim, seq), dtype=jnp.float32)

    result, y_out = cross_modal_attention_forward(params, x, y)
    jax.block_until_ready(result)

    # verify the fused Pallas kernel against a pure-JAX reference
    y_t = jnp.transpose(y, (2, 0, 1))
    h_vs = transformer_encoder(y_t, params["audio_attention"], params["num_heads"])
    y_k = h_vs[-1] @ params["y_affine_w"]
    result_ref = reference_spatial_part(x, y_k, params)
    # tolerance covers the EUP approximate-reciprocal softmax denominator
    np.testing.assert_allclose(np.asarray(result), np.asarray(result_ref),
                               rtol=1e-3, atol=1e-3)
    assert y_out.shape == y.shape

    print("KERNEL_OK")
</pallas_src>

<mosaic_0001>
module attributes {stable_mosaic.version = 11 : i64} {
  func.func @kernel(%arg0: i32, %arg1: memref<8x256xf32, #tpu.memory_space<vmem>>, %arg2: memref<32x7xf32, #tpu.memory_space<vmem>>, %arg3: memref<8x256xf32, #tpu.memory_space<vmem>>) attributes {dimension_semantics = [#tpu.dimension_semantics<arbitrary>], iteration_bounds = array<i64: 1>, scalar_prefetch = 0 : i64, scratch_operands = 0 : i64, tpu.core_type = #tpu.core_type<tc>, window_params = [{pipeline_mode = #tpu.pipeline_mode<synchronous>, transform_indices = @transform_0, window_bounds = array<i64: 8, 256>}, {pipeline_mode = #tpu.pipeline_mode<synchronous>, transform_indices = @transform_1, window_bounds = array<i64: 32, 7>}, {pipeline_mode = #tpu.pipeline_mode<synchronous>, transform_indices = @transform_2, window_bounds = array<i64: 8, 256>}]} {
    %c0 = arith.constant 0 : index
    %c0_0 = arith.constant 0 : index
    %0 = vector.load %arg1[%c0, %c0_0] : memref<8x256xf32, #tpu.memory_space<vmem>>, vector<8x256xf32>
    %c0_1 = arith.constant 0 : index
    %c0_2 = arith.constant 0 : index
    %1 = vector.load %arg2[%c0_1, %c0_2] : memref<32x7xf32, #tpu.memory_space<vmem>>, vector<32x7xf32>
    %2 = vector.extract_strided_slice %1 {offsets = [0, 0], sizes = [32, 4], strides = [1, 1]} : vector<32x7xf32> to vector<32x4xf32>
    %3 = vector.extract_strided_slice %1 {offsets = [0, 4], sizes = [32, 2], strides = [1, 1]} : vector<32x7xf32> to vector<32x2xf32>
    %4 = vector.extract_strided_slice %1 {offsets = [0, 6], sizes = [32, 1], strides = [1, 1]} : vector<32x7xf32> to vector<32x1xf32>
    %5 = vector.extract_strided_slice %3 {offsets = [0, 0], sizes = [32, 1], strides = [1, 1]} : vector<32x2xf32> to vector<32x1xf32>
    %6 = vector.shape_cast %5 : vector<32x1xf32> to vector<32x1xf32>
    %7 = vector.broadcast %6 : vector<32x1xf32> to vector<32x256xf32>
    %8 = vector.extract_strided_slice %3 {offsets = [0, 1], sizes = [32, 1], strides = [1, 1]} : vector<32x2xf32> to vector<32x1xf32>
    %9 = vector.shape_cast %8 : vector<32x1xf32> to vector<32x1xf32>
    %10 = vector.broadcast %9 : vector<32x1xf32> to vector<32x256xf32>
    %11 = vector.extract_strided_slice %2 {offsets = [0, 0], sizes = [32, 1], strides = [1, 1]} : vector<32x4xf32> to vector<32x1xf32>
    %12 = vector.shape_cast %11 : vector<32x1xf32> to vector<32x1xf32>
    %13 = vector.broadcast %12 : vector<32x1xf32> to vector<32x256xf32>
    %14 = vector.extract_strided_slice %0 {offsets = [0, 0], sizes = [1, 256], strides = [1, 1]} : vector<8x256xf32> to vector<1x256xf32>
    %15 = vector.broadcast %14 : vector<1x256xf32> to vector<32x256xf32>
    %16 = arith.mulf %13, %15 : vector<32x256xf32>
    %17 = arith.addf %7, %16 : vector<32x256xf32>
    %18 = vector.extract_strided_slice %0 {offsets = [4, 0], sizes = [1, 256], strides = [1, 1]} : vector<8x256xf32> to vector<1x256xf32>
    %19 = vector.broadcast %18 : vector<1x256xf32> to vector<32x256xf32>
    %20 = arith.mulf %13, %19 : vector<32x256xf32>
    %21 = arith.addf %10, %20 : vector<32x256xf32>
    %22 = vector.extract_strided_slice %2 {offsets = [0, 1], sizes = [32, 1], strides = [1, 1]} : vector<32x4xf32> to vector<32x1xf32>
    %23 = vector.shape_cast %22 : vector<32x1xf32> to vector<32x1xf32>
    %24 = vector.broadcast %23 : vector<32x1xf32> to vector<32x256xf32>
    %25 = vector.extract_strided_slice %0 {offsets = [1, 0], sizes = [1, 256], strides = [1, 1]} : vector<8x256xf32> to vector<1x256xf32>
    %26 = vector.broadcast %25 : vector<1x256xf32> to vector<32x256xf32>
    %27 = arith.mulf %24, %26 : vector<32x256xf32>
    %28 = arith.addf %17, %27 : vector<32x256xf32>
    %29 = vector.extract_strided_slice %0 {offsets = [5, 0], sizes = [1, 256], strides = [1, 1]} : vector<8x256xf32> to vector<1x256xf32>
    %30 = vector.broadcast %29 : vector<1x256xf32> to vector<32x256xf32>
    %31 = arith.mulf %24, %30 : vector<32x256xf32>
    %32 = arith.addf %21, %31 : vector<32x256xf32>
    %33 = vector.extract_strided_slice %2 {offsets = [0, 2], sizes = [32, 1], strides = [1, 1]} : vector<32x4xf32> to vector<32x1xf32>
    %34 = vector.shape_cast %33 : vector<32x1xf32> to vector<32x1xf32>
    %35 = vector.broadcast %34 : vector<32x1xf32> to vector<32x256xf32>
    %36 = vector.extract_strided_slice %0 {offsets = [2, 0], sizes = [1, 256], strides = [1, 1]} : vector<8x256xf32> to vector<1x256xf32>
    %37 = vector.broadcast %36 : vector<1x256xf32> to vector<32x256xf32>
    %38 = arith.mulf %35, %37 : vector<32x256xf32>
    %39 = arith.addf %28, %38 : vector<32x256xf32>
    %40 = vector.extract_strided_slice %0 {offsets = [6, 0], sizes = [1, 256], strides = [1, 1]} : vector<8x256xf32> to vector<1x256xf32>
    %41 = vector.broadcast %40 : vector<1x256xf32> to vector<32x256xf32>
    %42 = arith.mulf %35, %41 : vector<32x256xf32>
    %43 = arith.addf %32, %42 : vector<32x256xf32>
    %44 = vector.extract_strided_slice %2 {offsets = [0, 3], sizes = [32, 1], strides = [1, 1]} : vector<32x4xf32> to vector<32x1xf32>
    %45 = vector.shape_cast %44 : vector<32x1xf32> to vector<32x1xf32>
    %46 = vector.broadcast %45 : vector<32x1xf32> to vector<32x256xf32>
    %47 = vector.extract_strided_slice %0 {offsets = [3, 0], sizes = [1, 256], strides = [1, 1]} : vector<8x256xf32> to vector<1x256xf32>
    %48 = vector.broadcast %47 : vector<1x256xf32> to vector<32x256xf32>
    %49 = arith.mulf %46, %48 : vector<32x256xf32>
    %50 = arith.addf %39, %49 : vector<32x256xf32>
    %51 = vector.extract_strided_slice %0 {offsets = [7, 0], sizes = [1, 256], strides = [1, 1]} : vector<8x256xf32> to vector<1x256xf32>
    %52 = vector.broadcast %51 : vector<1x256xf32> to vector<32x256xf32>
    %53 = arith.mulf %46, %52 : vector<32x256xf32>
    %54 = arith.addf %43, %53 : vector<32x256xf32>
    %55 = vector.shape_cast %4 : vector<32x1xf32> to vector<32x1xf32>
    %56 = vector.broadcast %55 : vector<32x1xf32> to vector<32x256xf32>
    %57 = math.tanh %50 : vector<32x256xf32>
    %58 = arith.mulf %57, %56 : vector<32x256xf32>
    %cst = arith.constant dense<0.000000e+00> : vector<256xf32>
    %59 = vector.multi_reduction <add>, %58, %cst [0] : vector<32x256xf32> to vector<256xf32>
    %60 = vector.shape_cast %59 : vector<256xf32> to vector<1x256xf32>
    %61 = vector.extract_strided_slice %60 {offsets = [0, 0], sizes = [1, 64], strides = [1, 1]} : vector<1x256xf32> to vector<1x64xf32>
    %62 = vector.extract_strided_slice %60 {offsets = [0, 64], sizes = [1, 64], strides = [1, 1]} : vector<1x256xf32> to vector<1x64xf32>
    %63 = vector.extract_strided_slice %60 {offsets = [0, 128], sizes = [1, 64], strides = [1, 1]} : vector<1x256xf32> to vector<1x64xf32>
    %64 = vector.extract_strided_slice %60 {offsets = [0, 192], sizes = [1, 64], strides = [1, 1]} : vector<1x256xf32> to vector<1x64xf32>
    %65 = math.tanh %54 : vector<32x256xf32>
    %66 = arith.mulf %65, %56 : vector<32x256xf32>
    %cst_3 = arith.constant dense<0.000000e+00> : vector<256xf32>
    %67 = vector.multi_reduction <add>, %66, %cst_3 [0] : vector<32x256xf32> to vector<256xf32>
    %68 = vector.shape_cast %67 : vector<256xf32> to vector<1x256xf32>
    %69 = vector.extract_strided_slice %68 {offsets = [0, 0], sizes = [1, 64], strides = [1, 1]} : vector<1x256xf32> to vector<1x64xf32>
    %70 = vector.extract_strided_slice %68 {offsets = [0, 64], sizes = [1, 64], strides = [1, 1]} : vector<1x256xf32> to vector<1x64xf32>
    %71 = vector.extract_strided_slice %68 {offsets = [0, 128], sizes = [1, 64], strides = [1, 1]} : vector<1x256xf32> to vector<1x64xf32>
    %72 = vector.extract_strided_slice %68 {offsets = [0, 192], sizes = [1, 64], strides = [1, 1]} : vector<1x256xf32> to vector<1x64xf32>
    %73 = tpu.concatenate %61, %62, %63, %64, %69, %70, %71, %72 in 0 : vector<1x64xf32>, vector<1x64xf32>, vector<1x64xf32>, vector<1x64xf32>, vector<1x64xf32>, vector<1x64xf32>, vector<1x64xf32>, vector<1x64xf32> -> vector<8x64xf32>
    %cst_4 = arith.constant dense<0xFF800000> : vector<8xf32>
    %74 = vector.multi_reduction <maximumf>, %73, %cst_4 [1] : vector<8x64xf32> to vector<8xf32>
    %75 = vector.shape_cast %74 : vector<8xf32> to vector<8x1xf32>
    %76 = vector.broadcast %75 : vector<8x1xf32> to vector<8x64xf32>
    %77 = arith.subf %73, %76 : vector<8x64xf32>
    %78 = math.exp %77 : vector<8x64xf32>
    %cst_5 = arith.constant dense<0.000000e+00> : vector<8xf32>
    %79 = vector.multi_reduction <add>, %78, %cst_5 [1] : vector<8x64xf32> to vector<8xf32>
    %80 = vector.shape_cast %79 : vector<8xf32> to vector<8x1xf32>
    %81 = tpu.reciprocal %80 {approx = true} : vector<8x1xf32> -> vector<8x1xf32>
    %82 = vector.broadcast %81 : vector<8x1xf32> to vector<8x64xf32>
    %83 = arith.mulf %78, %82 : vector<8x64xf32>
    %84 = vector.extract_strided_slice %83 {offsets = [0, 0], sizes = [4, 64], strides = [1, 1]} : vector<8x64xf32> to vector<4x64xf32>
    %85 = vector.extract_strided_slice %83 {offsets = [4, 0], sizes = [4, 64], strides = [1, 1]} : vector<8x64xf32> to vector<4x64xf32>
    %86 = arith.addf %84, %85 : vector<4x64xf32>
    %87 = vector.extract_strided_slice %86 {offsets = [0, 0], sizes = [1, 64], strides = [1, 1]} : vector<4x64xf32> to vector<1x64xf32>
    %88 = vector.extract_strided_slice %86 {offsets = [1, 0], sizes = [1, 64], strides = [1, 1]} : vector<4x64xf32> to vector<1x64xf32>
    %89 = vector.extract_strided_slice %86 {offsets = [2, 0], sizes = [1, 64], strides = [1, 1]} : vector<4x64xf32> to vector<1x64xf32>
    %90 = vector.extract_strided_slice %86 {offsets = [3, 0], sizes = [1, 64], strides = [1, 1]} : vector<4x64xf32> to vector<1x64xf32>
    %91 = tpu.concatenate %87, %88, %89, %90 in 1 : vector<1x64xf32>, vector<1x64xf32>, vector<1x64xf32>, vector<1x64xf32> -> vector<1x256xf32>
    %92 = vector.broadcast %91 : vector<1x256xf32> to vector<8x256xf32>
    %93 = arith.mulf %0, %92 : vector<8x256xf32>
    %c0_6 = arith.constant 0 : index
    %c0_7 = arith.constant 0 : index
    %94 = vector.load %arg3[%c0_6, %c0_7] : memref<8x256xf32, #tpu.memory_space<vmem>>, vector<8x256xf32>
    tpu.vector_store %arg3[%c0_6, %c0_7], %93 {strides = array<i32>} : memref<8x256xf32, #tpu.memory_space<vmem>>, vector<8x256xf32>,
    return
  }
  func.func @transform_0(%arg0: i32) -> (i32, i32) {
    %c0_i32 = arith.constant 0 : i32
    %c0_i32_0 = arith.constant 0 : i32
    %c0_i32_1 = arith.constant 0 : i32
    return %c0_i32, %c0_i32_0 : i32, i32
  }
  func.func @transform_1(%arg0: i32) -> (i32, i32) {
    %c0_i32 = arith.constant 0 : i32
    %c0_i32_0 = arith.constant 0 : i32
    %c0_i32_1 = arith.constant 0 : i32
    return %c0_i32, %c0_i32_0 : i32, i32
  }
  func.func @transform_2(%arg0: i32) -> (i32, i32) {
    %c0_i32 = arith.constant 0 : i32
    %c0_i32_0 = arith.constant 0 : i32
    %c0_i32_1 = arith.constant 0 : i32
    return %c0_i32, %c0_i32_0 : i32, i32
  }
}

</mosaic_0001>

<bundles_post_ra>
// kernel: tpu_custom_call.1
= control target key start
LH: loop header
LB: loop body
LE: loop exit
PB: predicated region body
PF: predicated region fallthrough
CT: control target
= control target key end

     0   :  { %v568_v1 = vmov 0   ;;  %v569_v2 = vmov 4   ;;  %s824_s0 = inlined_call_operand.vmem [shape: f32[8,256], index: 0, kind: input, shape index: {}]   ;;  %s825_s1 = inlined_call_operand.vmem [shape: f32[32,7], index: 1, kind: input, shape index: {}]   ;;  %s826_s2 = inlined_call_operand.hbm [shape: f32[8,256], index: 2, kind: output, shape index: {}]  }
   0x1   :  { %v14_v0 = vld [vmem:[%s825_s1] sm:$0xff]  ;;  %488 = vset.pattern.permute.xlu0 %v568_v1  ;;  %489 = vset.pattern.permute.xlu1 %v569_v2 }
   0x2   :  { %20 = vperm.xlu1 %489, %v14_v0   ;;  %55 = vperm.xlu0 %488, %v14_v0  }
   0x3   :  { %7 = vsyncpa [#allocation3], 0  ;;  %v15_v3 = vld [vmem:[%s825_s1 + $0x8] sm:$0xff]  ;;  %v16_v4 = vld [vmem:[%s825_s1 + $0x10] sm:$0xff]  ;;  %v570_v5 = vmov 1   ;;  %v571_v7 = vmov 5   ;;  %v70_v18 = vlaneseq }
   0x4   :  { %v17_v6 = vld [vmem:[%s825_s1 + $0x18] sm:$0xff]  ;;  %v572_v8 = vmov 2   ;;  %v573_v9 = vmov 3   ;;  %v574_v10 = vmov 6   ;;  %v617_v24 = vld [vmem:[%s824_s0] sm:$0xff]  ;;  %v624_v26 = vld [vmem:[%s824_s0 + $0x8] sm:$0xff] }
   0x5   :  { %v71_v20 = vshrl.u32 %v70_v18, 7  ;;  %s575_s0 = smov 64   ;;  %vm410_vm0 = vcmask 1040384   ;;  %vm412_vm1 = vcmask 1041408   ;;  %vm414_vm2 = vcmask 1042432   ;;  %s576_s20 = smov [#allocation2]  }
   0x6   :  { %25 = vperm.xlu1 %489, %v15_v3   ;;  %59 = vperm.xlu0 %488, %v15_v3   ;;  %vm416_vm3 = vcmask 1043456   ;;  %vm418_vm4 = vcmask 1044480   ;;  %vm420_vm5 = vcmask 1045504   ;;  %vm422_vm6 = vcmask 1046528   ;;  %s471_s21 = sshll.u32 %s576_s20, 4  ;;  %s472_s21 = int_to_ptr.vmem [resolvable:$true] %s471_s21 }
   0x7   :  { %v612_v23 = vsub.s32 0, %v71_v20  ;;  %v136_v28 = vsub.s32 1, %v71_v20  ;;  %v160_v29 = vsub.s32 5, %v71_v20  ;;  %v96_v31 = vsub.s32 4, %v71_v20  ;;  %s544_s22 = scalar_lea.vmem %s472_s21, 256  ;;  %p549_p1 = scmp.lt.s32.totalorder %s472_s21, %s472_s21 }
   0x8   :  { %v200_v33 = vsub.s32 2, %v71_v20  ;;  %v224_v34 = vsub.s32 6, %v71_v20  ;;  %v264_v35 = vsub.s32 3, %v71_v20  ;;  %v288_v41 = vsub.s32 7, %v71_v20  ;;  %p545_p0 = scmp.ne.s32.totalorder %s472_s21, %s544_s22  ;;  %p550_p2 = scmp.lt.s32.totalorder %s544_s22, %s544_s22 }
   0x9   :  { %v630_v30 = vrot.slane %v617_v24, %v612_v23  ;;  %v634_v32 = vrot.slane %v624_v26, %v612_v23  ;;  %v137_v36 = vrot.slane %v617_v24, %v136_v28  ;;  %v638_v37 = vrot.slane %v624_v26, %v136_v28 }
   0xa   :  { %490 = vset.pattern.permute.xlu1 %v570_v5  ;;  %63 = vperm.xlu0 %488, %v16_v4   ;;  %v641_v38 = vrot.slane %v617_v24, %v160_v29  ;;  %v649_v43 = vrot.slane %v617_v24, %v96_v31  ;;  %v652_v44 = vrot.slane %v624_v26, %v96_v31  ;;  %vm424_vm7 = vcmask 523264   ;;  %p551_p3 = por %p550_p2, %p549_p1 }
   0xb   :  { %119 = vperm.xlu1 %490, %v14_v0   ;;  %v655_v45 = vrot.slane %v624_v26, %v160_v29  ;;  %v659_v47 = vrot.slane %v617_v24, %v200_v33  ;;  %v662_v48 = vrot.slane %v624_v26, %v200_v33  ;;  %v665_v49 = vrot.slane %v617_v24, %v224_v34 }
   0xc   :  { %v669_v51 = vrot.slane %v624_v26, %v224_v34  ;;  %v672_v52 = vrot.slane %v617_v24, %v264_v35  ;;  %v675_v53 = vrot.slane %v624_v26, %v264_v35  ;;  %v680_v56 = vrot.slane %v617_v24, %v288_v41  ;;  %p552_p4 = pnand %p551_p3, %p545_p0 }
   0xd   :  { %v683_v57 = vrot.slane %v624_v26, %v288_v41 }
   0xe   :  { %491 = vset.pattern.permute.xlu0 %v570_v5 }
   0xf   :  { %492 = vset.pattern.permute.xlu1 %v569_v2  ;;  %123 = vperm.xlu0 %491, %v15_v3  }
  0x10   :  { %30 = vperm.xlu1 %492, %v16_v4  }
  0x13   :  { %127 = vperm.xlu0 %491, %v16_v4  }
  0x14   :  { %493 = vset.pattern.permute.xlu1 %v568_v1 }
  0x15   :  { %67 = vperm.xlu1 %493, %v17_v6  }
  0x17   :  { %497 = vset.pattern.permute.xlu0 %v571_v7 }
  0x18   :  { %43 = vperm.xlu0 %497, %v15_v3  }
  0x19   :  { %494 = vset.pattern.permute.xlu1 %v572_v8 }
  0x1a   :  { %183 = vperm.xlu1 %494, %v14_v0  }
  0x1c   :  { %498 = vset.pattern.permute.xlu0 %v572_v8 }
  0x1d   :  { %187 = vperm.xlu0 %498, %v15_v3  }
  0x1e   :  { %495 = vset.pattern.permute.xlu1 %v569_v2 }
  0x1f   :  { %35 = vperm.xlu1 %495, %v17_v6  }
  0x21   :  { %195 = vperm.xlu0 %498, %v17_v6  }
  0x23   :  { %496 = vset.pattern.permute.xlu1 %v571_v7 }
  0x24   :  { %39 = vperm.xlu1 %496, %v14_v0  }
  0x25   :  { %503 = vset.pattern.permute.xlu0 %v573_v9 }
  0x26   :  { %247 = vperm.xlu0 %503, %v14_v0  }
  0x28   :  { %499 = vset.pattern.permute.xlu1 %v570_v5 }
  0x29   :  { %131 = vperm.xlu1 %499, %v17_v6  }
  0x2a   :  { %259 = vperm.xlu0 %503, %v17_v6  }
  0x2d   :  { %500 = vset.pattern.permute.xlu1 %v572_v8 }
  0x2e   :  { %191 = vperm.xlu1 %500, %v16_v4   ;;  %507 = vset.pattern.permute.xlu0 %v574_v10 }
  0x2f   :  { %319 = vperm.xlu0 %507, %v16_v4  }
  0x32   :  { %501 = vset.pattern.permute.xlu1 %v573_v9 }
  0x33   :  { %251 = vperm.xlu1 %501, %v15_v3  }
  0x37   :  { %502 = vset.pattern.permute.xlu1 %v571_v7 }
  0x38   :  { %47 = vperm.xlu1 %502, %v16_v4  }
  0x3c   :  { %504 = vset.pattern.permute.xlu1 %v573_v9 }
  0x3d   :  { %255 = vperm.xlu1 %504, %v16_v4  }
  0x41   :  { %505 = vset.pattern.permute.xlu1 %v571_v7 }
  0x42   :  { %51 = vperm.xlu1 %505, %v17_v6  }
  0x46   :  { %506 = vset.pattern.permute.xlu1 %v574_v10 }
  0x47   :  { %311 = vperm.xlu1 %506, %v14_v0  }
  0x4b   :  { %315 = vperm.xlu1 %506, %v15_v3  }
  0x4f   :  { %323 = vperm.xlu1 %506, %v17_v6  }
  0x81   :  { %v21_v11 = vpop.permute.xlu1 %20  ;;  %v56_v12 = vpop.permute.xlu0 %55 }
  0x82   :  { %v78_v42 = vmul.f32 %v630_v30, %v56_v12  ;;  %v79_v46 = vmul.f32 %v634_v32, %v56_v12  ;;  %v102_v55 = vmul.f32 %v649_v43, %v56_v12  ;;  %v103_v62 = vmul.f32 %v652_v44, %v56_v12 }
  0x84   :  { %v86_v58 = vadd.f32 %v78_v42, %v21_v11  ;;  %v87_v63 = vadd.f32 %v79_v46, %v21_v11 }
  0x85   :  { %v26_v13 = vpop.permute.xlu1 %25  ;;  %v60_v14 = vpop.permute.xlu0 %59 }
  0x86   :  { %v80_v50 = vmul.f32 %v630_v30, %v60_v14  ;;  %v81_v54 = vmul.f32 %v634_v32, %v60_v14  ;;  %v104_v2 = vmul.f32 %v649_v43, %v60_v14  ;;  %v105_v7 = vmul.f32 %v652_v44, %v60_v14 }
  0x88   :  { %v88_v4 = vadd.f32 %v80_v50, %v26_v13  ;;  %v89_v8 = vadd.f32 %v81_v54, %v26_v13 }
  0x89   :  { %v64_v15 = vpop.permute.xlu0 %63 }
  0x8a   :  { %v604_v16 = vpop.permute.xlu1 %119  ;;  %v82_v0 = vmul.f32 %v630_v30, %v64_v15  ;;  %v83_v1 = vmul.f32 %v634_v32, %v64_v15  ;;  %v701_v10 = vmul.f32 %v649_v43, %v64_v15  ;;  %v704_v11 = vmul.f32 %v652_v44, %v64_v15 }
  0x8b   :  { %v142_v59 = vmul.f32 %v137_v36, %v604_v16  ;;  %v143_v60 = vmul.f32 %v638_v37, %v604_v16  ;;  %v166_v9 = vmul.f32 %v641_v38, %v604_v16  ;;  %v167_v28 = vmul.f32 %v655_v45, %v604_v16 }
  0x8d   :  { %v150_v12 = vadd.f32 %v142_v59, %v86_v58  ;;  %v151_v18 = vadd.f32 %v143_v60, %v87_v63 }
  0x8e   :  { %v606_v17 = vpop.permute.xlu0 %123 }
  0x8f   :  { %v31_v19 = vpop.permute.xlu1 %30  ;;  %v144_v5 = vmul.f32 %v137_v36, %v606_v17  ;;  %v145_v6 = vmul.f32 %v638_v37, %v606_v17  ;;  %v168_v13 = vmul.f32 %v641_v38, %v606_v17  ;;  %v169_v14 = vmul.f32 %v655_v45, %v606_v17 }
  0x90   :  { %v90_v29 = vadd.f32 %v82_v0, %v31_v19  ;;  %v91_v31 = vadd.f32 %v83_v1, %v31_v19 }
  0x91   :  { %v152_v34 = vadd.f32 %v144_v5, %v88_v4  ;;  %v153_v35 = vadd.f32 %v145_v6, %v89_v8 }
  0x92   :  { %v608_v21 = vpop.permute.xlu0 %127 }
  0x93   :  { %v146_v15 = vmul.f32 %v137_v36, %v608_v21  ;;  %v147_v42 = vmul.f32 %v638_v37, %v608_v21  ;;  %v721_v46 = vmul.f32 %v641_v38, %v608_v21  ;;  %v725_v17 = vmul.f32 %v655_v45, %v608_v21 }
  0x94   :  { %v610_v22 = vpop.permute.xlu1 %67 }
  0x95   :  { %v84_v50 = vmul.f32 %v630_v30, %v610_v22  ;;  %v85_v54 = vmul.f32 %v634_v32, %v610_v22 }
  0x97   :  { %v619_v25 = vpop.permute.xlu0 %43 }
  0x98   :  { %v112_v59 = vadd.f32 %v104_v2, %v619_v25  ;;  %v113_v60 = vadd.f32 %v105_v7, %v619_v25 }
  0x99   :  { %v626_v27 = vpop.permute.xlu1 %183 }
  0x9a   :  { %v206_v16 = vmul.f32 %v659_v47, %v626_v27  ;;  %v231_v1 = vmul.f32 %v669_v51, %v626_v27 }
  0x9c   :  { %v643_v39 = vpop.permute.xlu0 %187 }
  0x9d   :  { %v208_v8 = vmul.f32 %v659_v47, %v643_v39 }
  0x9e   :  { %v645_v40 = vpop.permute.xlu1 %35 }
  0x9f   :  { %v92_v30 = vadd.f32 %v84_v50, %v645_v40  ;;  %v93_v25 = vadd.f32 %v85_v54, %v645_v40  ;;  %v209_v40 = vmul.f32 %v662_v48, %v643_v39  ;;  %v176_v50 = vadd.f32 %v168_v13, %v112_v59 }
  0xa0   :  { %v692_v3 = vpop.permute.xlu0 %195  ;;  %v216_v13 = vadd.f32 %v208_v8, %v152_v34 }
  0xa3   :  { %v40_v61 = vpop.permute.xlu1 %39 }
  0xa4   :  { %v110_v20 = vadd.f32 %v102_v55, %v40_v61  ;;  %v111_v41 = vadd.f32 %v103_v62, %v40_v61  ;;  %v207_v61 = vmul.f32 %v662_v48, %v626_v27  ;;  %v230_v62 = vmul.f32 %v665_v49, %v626_v27 }
  0xa5   :  { %v248_v19 = vpop.permute.xlu0 %247 }
  0xa6   :  { %v174_v55 = vadd.f32 %v166_v9, %v110_v20  ;;  %v175_v63 = vadd.f32 %v167_v28, %v111_v41  ;;  %v270_v32 = vmul.f32 %v672_v52, %v248_v19  ;;  %v271_v2 = vmul.f32 %v675_v53, %v248_v19 }
  0xa7   :  { %v294_v5 = vmul.f32 %v680_v56, %v248_v19  ;;  %v215_v7 = vadd.f32 %v207_v61, %v151_v18  ;;  %v213_v9 = vmul.f32 %v662_v48, %v692_v3  ;;  %v295_v41 = vmul.f32 %v683_v57, %v248_v19 }
  0xa8   :  { %v712_v33 = vpop.permute.xlu1 %131  ;;  %v238_v4 = vadd.f32 %v230_v62, %v174_v55  ;;  %v239_v20 = vadd.f32 %v231_v1, %v175_v63  ;;  %v232_v18 = vmul.f32 %v665_v49, %v643_v39  ;;  %v233_v63 = vmul.f32 %v669_v51, %v643_v39 }
  0xa9   :  { %v148_v58 = vmul.f32 %v137_v36, %v712_v33  ;;  %v149_v21 = vmul.f32 %v638_v37, %v712_v33  ;;  %v214_v36 = vadd.f32 %v206_v16, %v150_v12  ;;  %v212_v37 = vmul.f32 %v659_v47, %v692_v3  ;;  %v753_v27 = vpop.permute.xlu0 %259 }
  0xaa   :  { %v154_v16 = vadd.f32 %v146_v15, %v90_v29  ;;  %v279_v54 = vadd.f32 %v271_v2, %v215_v7  ;;  %v302_v61 = vadd.f32 %v294_v5, %v238_v4  ;;  %v277_v29 = vmul.f32 %v675_v53, %v753_v27 }
  0xab   :  { %v156_v6 = vadd.f32 %v148_v58, %v92_v30  ;;  %v157_v12 = vadd.f32 %v149_v21, %v93_v25  ;;  %v278_v28 = vadd.f32 %v270_v32, %v214_v36  ;;  %v155_v58 = vadd.f32 %v147_v42, %v91_v31 }
  0xac   :  { %v276_v21 = vmul.f32 %v672_v52, %v753_v27  ;;  %v177_v30 = vadd.f32 %v169_v14, %v113_v60  ;;  %v217_v15 = vadd.f32 %v209_v40, %v153_v35  ;;  %v303_v19 = vadd.f32 %v295_v41, %v239_v20 }
  0xad   :  { %v192_v0 = vpop.permute.xlu1 %191  ;;  %v220_v62 = vadd.f32 %v212_v37, %v156_v6  ;;  %v221_v32 = vadd.f32 %v213_v9, %v157_v12  ;;  %508 = vtanh.f32 %v278_v28  ;;  %v240_v59 = vadd.f32 %v232_v18, %v176_v50 }
  0xae   :  { %510 = vtanh.f32 %v279_v54  ;;  %v210_v31 = vmul.f32 %v659_v47, %v192_v0  ;;  %v211_v14 = vmul.f32 %v662_v48, %v192_v0  ;;  %v241_v2 = vadd.f32 %v233_v63, %v177_v30 }
  0xaf   :  { %512 = vtanh.f32 %v302_v61  ;;  %v284_v36 = vadd.f32 %v276_v21, %v220_v62  ;;  %v285_v1 = vadd.f32 %v277_v29, %v221_v32  ;;  %v234_v47 = vmul.f32 %v665_v49, %v192_v0 }
  0xb0   :  { %514 = vtanh.f32 %v303_v19  ;;  %v235_v37 = vmul.f32 %v669_v51, %v192_v0  ;;  %v218_v4 = vadd.f32 %v210_v31, %v154_v16  ;;  %v219_v7 = vadd.f32 %v211_v14, %v155_v58 }
  0xb1   :  { %516 = vtanh.f32 %v284_v36  ;;  %v172_v62 = vmul.f32 %v641_v38, %v712_v33  ;;  %v173_v63 = vmul.f32 %v655_v45, %v712_v33  ;;  %v301_v45 = vmul.f32 %v683_v57, %v753_v27 }
  0xb2   :  { %v252_v55 = vpop.permute.xlu1 %251  ;;  %518 = vtanh.f32 %v285_v1 }
  0xb3   :  { %v272_v42 = vmul.f32 %v672_v52, %v252_v55  ;;  %v273_v39 = vmul.f32 %v675_v53, %v252_v55  ;;  %v296_v25 = vmul.f32 %v680_v56, %v252_v55  ;;  %v297_v9 = vmul.f32 %v683_v57, %v252_v55 }
  0xb4   :  { %v108_v55 = vmul.f32 %v649_v43, %v610_v22  ;;  %v236_v43 = vmul.f32 %v665_v49, %v692_v3 }
  0xb5   :  { %v280_v5 = vadd.f32 %v272_v42, %v216_v13  ;;  %v281_v8 = vadd.f32 %v273_v39, %v217_v15  ;;  %v305_v41 = vadd.f32 %v297_v9, %v241_v2  ;;  %v300_v15 = vmul.f32 %v680_v56, %v753_v27 }
  0xb7   :  { %v48_v60 = vpop.permute.xlu1 %47  ;;  %520 = vtanh.f32 %v280_v5 }
  0xb8   :  { %v114_v34 = vadd.f32 %v701_v10, %v48_v60  ;;  %v115_v35 = vadd.f32 %v704_v11, %v48_v60  ;;  %v304_v10 = vadd.f32 %v296_v25, %v240_v59  ;;  %522 = vtanh.f32 %v281_v8 }
  0xba   :  { %v178_v48 = vadd.f32 %v721_v46, %v114_v34  ;;  %v179_v6 = vadd.f32 %v725_v17, %v115_v35  ;;  %v509_v17 = vpop.eup %508  ;;  %524 = vtanh.f32 %v304_v10 }
  0xbb   :  { %v511_v18 = vpop.eup %510 }
  0xbc   :  { %v242_v11 = vadd.f32 %v234_v47, %v178_v48  ;;  %v243_v12 = vadd.f32 %v235_v37, %v179_v6  ;;  %v256_v40 = vpop.permute.xlu1 %255 }
  0xbd   :  { %v274_v20 = vmul.f32 %v672_v52, %v256_v40  ;;  %v275_v0 = vmul.f32 %v675_v53, %v256_v40  ;;  %v298_v28 = vmul.f32 %v680_v56, %v256_v40  ;;  %v299_v46 = vmul.f32 %v683_v57, %v256_v40  ;;  %v513_v53 = vpop.eup %512 }
  0xbe   :  { %v109_v52 = vmul.f32 %v652_v44, %v610_v22  ;;  %v515_v32 = vpop.eup %514  ;;  %v237_v22 = vmul.f32 %v669_v51, %v692_v3  ;;  %v320_v51 = vpop.permute.xlu0 %319 }
  0xbf   :  { %v282_v16 = vadd.f32 %v274_v20, %v218_v4  ;;  %v283_v50 = vadd.f32 %v275_v0, %v219_v7  ;;  %v306_v54 = vadd.f32 %v298_v28, %v242_v11  ;;  %v307_v58 = vadd.f32 %v299_v46, %v243_v12  ;;  %v517_v13 = vpop.eup %516 }
  0xc0   :  { %v519_v38 = vpop.eup %518 }
  0xc1   :  { %526 = vtanh.f32 %v282_v16  ;;  %v52_v61 = vpop.permute.xlu1 %51  ;;  %v521_v49 = vpop.eup %520 }
  0xc2   :  { %528 = vtanh.f32 %v283_v50  ;;  %v116_v21 = vadd.f32 %v108_v55, %v52_v61  ;;  %v117_v30 = vadd.f32 %v109_v52, %v52_v61  ;;  %v523_v36 = vpop.eup %522 }
  0xc3   :  { %530 = vtanh.f32 %v305_v41 }
  0xc4   :  { %532 = vtanh.f32 %v306_v54  ;;  %v180_v44 = vadd.f32 %v172_v62, %v116_v21  ;;  %v181_v29 = vadd.f32 %v173_v63, %v117_v30  ;;  %v525_v3 = vpop.eup %524 }
  0xc5   :  { %534 = vtanh.f32 %v307_v58 }
  0xc6   :  { %v244_v33 = vadd.f32 %v236_v43, %v180_v44  ;;  %v245_v19 = vadd.f32 %v237_v22, %v181_v29  ;;  %v312_v59 = vpop.permute.xlu1 %311 }
  0xc7   :  { %v334_v14 = vmul.f32 %v509_v17, %v312_v59  ;;  %v335_v1 = vmul.f32 %v511_v18, %v312_v59  ;;  %v368_v7 = vmul.f32 %v513_v53, %v312_v59  ;;  %v369_v11 = vmul.f32 %v515_v32, %v312_v59 }
  0xc8   :  { %v308_v31 = vadd.f32 %v300_v15, %v244_v33  ;;  %v309_v42 = vadd.f32 %v301_v45, %v245_v19 }
  0xca   :  { %536 = vtanh.f32 %v308_v31  ;;  %v316_v39 = vpop.permute.xlu1 %315 }
  0xcb   :  { %v527_v60 = vpop.eup %526  ;;  %538 = vtanh.f32 %v309_v42  ;;  %v336_v25 = vmul.f32 %v521_v49, %v316_v39  ;;  %v337_v56 = vmul.f32 %v523_v36, %v316_v39  ;;  %v370_v47 = vmul.f32 %v525_v3, %v316_v39 }
  0xcc   :  { %v529_v34 = vpop.eup %528  ;;  %v338_v35 = vmul.f32 %v527_v60, %v320_v51 }
  0xcd   :  { %v531_v57 = vpop.eup %530  ;;  %v342_v27 = vadd.f32 %v336_v25, %v334_v14  ;;  %v351_v2 = vadd.f32 %v337_v56, %v335_v1  ;;  %v339_v37 = vmul.f32 %v529_v34, %v320_v51  ;;  %v376_v40 = vadd.f32 %v370_v47, %v368_v7 }
  0xce   :  { %v533_v4 = vpop.eup %532  ;;  %v371_v5 = vmul.f32 %v531_v57, %v316_v39  ;;  %v324_v48 = vpop.permute.xlu1 %323 }
  0xcf   :  { %v535_v6 = vpop.eup %534  ;;  %v343_v8 = vadd.f32 %v342_v27, %v338_v35  ;;  %v352_v9 = vadd.f32 %v351_v2, %v339_v37  ;;  %v340_v10 = vmul.f32 %v517_v13, %v324_v48  ;;  %v341_v12 = vmul.f32 %v519_v38, %v324_v48 }
  0xd0   :  { %v372_v20 = vmul.f32 %v533_v4, %v320_v51  ;;  %v385_v28 = vadd.f32 %v371_v5, %v369_v11  ;;  %v373_v46 = vmul.f32 %v535_v6, %v320_v51 }
  0xd1   :  { %v344_v0 = vadd.f32 %v343_v8, %v340_v10  ;;  %v353_v17 = vadd.f32 %v352_v9, %v341_v12 }
  0xd2   :  { %v377_v54 = vadd.f32 %v376_v40, %v372_v20  ;;  %v386_v58 = vadd.f32 %v385_v28, %v373_v46 }
  0xd3   :  { %v345_v41 = vrot.slane %v344_v0, 4  ;;  %v354_v50 = vrot.slane %v353_v17, 4 }
  0xd4   :  { %v537_v16 = vpop.eup %536 }
  0xd5   :  { %v539_v18 = vpop.eup %538  ;;  %v374_v55 = vmul.f32 %v537_v16, %v324_v48  ;;  %v346_v52 = vadd.f32 %v345_v41, %v344_v0  ;;  %v355_v61 = vadd.f32 %v354_v50, %v353_v17 }
  0xd6   :  { %v375_v53 = vmul.f32 %v539_v18, %v324_v48 }
  0xd7   :  { %v378_v62 = vadd.f32 %v377_v54, %v374_v55  ;;  %v347_v21 = vrot.slane %v346_v52, 2  ;;  %v356_v63 = vrot.slane %v355_v61, 2 }
  0xd8   :  { %v387_v30 = vadd.f32 %v386_v58, %v375_v53 }
  0xd9   :  { %v379_v32 = vrot.slane %v378_v62, 4  ;;  %v348_v43 = vadd.f32 %v347_v21, %v346_v52  ;;  %v357_v44 = vadd.f32 %v356_v63, %v355_v61 }
  0xda   :  { %v388_v22 = vrot.slane %v387_v30, 4 }
  0xdb   :  { %v349_v29 = vrot.slane %v348_v43, 1  ;;  %v380_v13 = vadd.f32 %v379_v32, %v378_v62  ;;  %v358_v38 = vrot.slane %v357_v44, 1 }
  0xdc   :  { %v389_v15 = vadd.f32 %v388_v22, %v387_v30 }
  0xdd   :  { %v350_v45 = vadd.f32 %v349_v29, %v348_v43  ;;  %v381_v33 = vrot.slane %v380_v13, 2  ;;  %v359_v19 = vadd.f32 %v358_v38, %v357_v44 }
  0xde   :  { %v390_v59 = vrot.slane %v389_v15, 2 }
  0xdf   :  { %395 = vrot.lane.b32.xlu1 %v350_v45, %s575_s0  ;;  %v382_v49 = vadd.f32 %v381_v33, %v380_v13  ;;  %399 = vrot.lane.b32.xlu0 %v359_v19, %s575_s0 }
  0xe0   :  { %v391_v31 = vadd.f32 %v390_v59, %v389_v15 }
  0xe1   :  { %v383_v42 = vrot.slane %v382_v49, 1 }
  0xe2   :  { %v392_v36 = vrot.slane %v391_v31, 1 }
  0xe3   :  { %v384_v51 = vadd.f32 %v383_v42, %v382_v49 }
  0xe4   :  { %v393_v3 = vadd.f32 %v392_v36, %v391_v31 }
  0xe5   :  { %403 = vrot.lane.b32.xlu1 %v384_v51, %s575_s0 }
  0xe6   :  { %407 = vrot.lane.b32.xlu0 %v393_v3, %s575_s0 }
 0x151   :  { %v396_v14 = vpop.permute.xlu1 %395  ;;  %v400_v60 = vpop.permute.xlu0 %399 }
 0x152   :  { %v411_v39 = vsel %vm410_vm0, %v350_v45, %v396_v14 }
 0x153   :  { %v413_v1 = vsel %vm412_vm1, %v411_v39, %v359_v19 }
 0x154   :  { %v415_v25 = vsel %vm414_vm2, %v413_v1, %v400_v60 }
 0x155   :  { %v417_v56 = vsel %vm416_vm3, %v415_v25, %v384_v51 }
 0x157   :  { %v404_v34 = vpop.permute.xlu1 %403 }
 0x158   :  { %v419_v35 = vsel %vm418_vm4, %v417_v56, %v404_v34  ;;  %v408_v57 = vpop.permute.xlu0 %407 }
 0x159   :  { %v421_v27 = vsel %vm420_vm5, %v419_v35, %v393_v3 }
 0x15a   :  { %v423_v2 = vsel %vm422_vm6, %v421_v27, %v408_v57 }
 0x15b   :  { %v425_v47 = vsel %vm424_vm7, %v423_v2, -inf }
 0x15c   :  { %426 = vmax.xlane.f32.xlu1 %v425_v47 }
 0x1e9   :  { %v427_v37 = vpop.xlane.xlu1 %426 }
 0x1ea   :  { %v428_v4 = vsub.f32 %v423_v2, %v427_v37 }
 0x1ec   :  { %v429_v5 = vmul.f32 1.442695, %v428_v4 }
 0x1ee   :  { %540 = vpow2.f32 %v429_v5 }
 0x1f8   :  { %v541_v48 = vpop.eup %540 }
 0x1f9   :  { %v431_v6 = vsel %vm424_vm7, %v541_v48, 0.0 }
 0x1fa   :  { %432 = vadd.xlane.f32.xlu0 %v431_v6 }
 0x287   :  { %v433_v7 = vpop.xlane.xlu0 %432 }
 0x288   :  { %542 = vrcp.f32 %v433_v7 }
 0x292   :  { %v543_v8 = vpop.eup %542 }
 0x293   :  { %v435_v9 = vmul.f32 %v543_v8, %v541_v48 }
 0x295   :  { %v437_v10 = vrot.slane %v435_v9, 4 }
 0x297   :  { %v439_v11 = vadd.f32 %v437_v10, %v435_v9 }
 0x299   :  { %v447_v12 = vrot.slane %v439_v11, 3  ;;  %v441_v40 = vrot.slane %v439_v11, 1  ;;  %v445_v20 = vrot.slane %v439_v11, 2 }
 0x29b   :  { %448 = vrot.lane.b32.xlu1 %v447_v12, %s575_s0  ;;  %442 = vrot.lane.b32.xlu0 %v441_v40, %s575_s0 }
 0x30d   :  { %v449_v0 = vpop.permute.xlu1 %448  ;;  %v443_v28 = vpop.permute.xlu0 %442 }
 0x30e   :  { %v452_v46 = vsel %vm424_vm7, %v445_v20, %v449_v0  ;;  %v451_v17 = vsel %vm424_vm7, %v439_v11, %v443_v28 }
 0x30f   :  { %v460_v41 = vrot.slane %v452_v46, %v612_v23  ;;  %v456_v16 = vrot.slane %v451_v17, %v612_v23 }
 0x311   :  { %v461_v50 = vmul.f32 %v456_v16, %v617_v24  ;;  %v462_v18 = vmul.f32 %v460_v41, %v624_v26 }
 0x313   :  { %463 = vst [vmem:[#allocation2] sm:$0xff] %v461_v50  ;;  %464 = vst [vmem:[#allocation2 + $0x8] sm:$0xff] %v462_v18 }
 0x314   :  { %555 = shalt.err (!%p552_p4)
}
 0x315   :  { %s556_s25 = scalar_lea.hbm %s826_s2, 256 }
 0x316   :  { %p557_p5 = scmp.ne.s32.totalorder %s826_s2, %s556_s25  ;;  %p560_p6 = scmp.lt.u32.totalorder %s556_s25, %s826_s2 }
 0x318   :  { %p562_p7 = pnand %p560_p6, %p557_p5 }
 0x31a   :  { %565 = shalt.err (!%p562_p7)
}
 0x31b   :  { %474 = dma.vmem_to_hbm [thread:$0]  %s472_s21, 256, %s826_s2, [#allocation3]  }
 0x31c   :  { %566 = dma.done.wait [#allocation3], 256  }
 0x31d   :  { %567 = vsyncadd [#allocation3], 4294967040 }
 0x31e   :  { %478 = vsyncpa [#allocation3], 1 }

</bundles_post_ra>
